<compile_context>
chip_gen: v7x
topology: tpu7x:2x2x1
jax: 0.10.0
libtpu: 0.0.40
codegen_flags: <defaults>
</compile_context>

<pallas_src>
import functools
import math

import jax
import jax.numpy as jnp
from jax.experimental import pallas as pl
from jax.experimental.pallas import tpu as pltpu


_PARALLEL_1D = pltpu.CompilerParams(dimension_semantics=("parallel",))


def norm_num_groups(c, num_groups=32):
    """Replicates Normalize()'s group-count selection."""
    if num_groups > c:
        num_groups = 1
    if c % num_groups != 0:
        for i in range(min(num_groups, c), 0, -1):
            if c % i == 0:
                num_groups = i
                break
        if c % num_groups != 0:
            num_groups = 1
    return num_groups


# ------------------------------ Pallas kernels ------------------------------

def _gn_swish_kernel(x_ref, g_ref, b_ref, *rest, groups, cg, eps, swish):
    """GroupNorm (+ optional SiLU) for one image.  x_ref: (1, H*W, C)."""
    if groups == 1:
        (o_ref,) = rest
    else:
        m_ref, mt_ref, o_ref = rest
    x = x_ref[0].astype(jnp.float32)                       # (T, C)
    t = x.shape[0]
    inv_n = 1.0 / float(t * cg)
    if groups == 1:
        mean = jnp.sum(x) * inv_n
        xc = x - mean
        var = jnp.sum(xc * xc) * inv_n
        y = xc * jax.lax.rsqrt(var + eps)
    else:
        m = m_ref[...].astype(jnp.float32)                 # (C, G) one-hot
        mt = mt_ref[...].astype(jnp.float32)               # (G, C)
        ch_sum = jnp.sum(x, axis=0, keepdims=True)         # (1, C)
        g_mean = jnp.dot(ch_sum, m, preferred_element_type=jnp.float32) * inv_n
        mean_c = jnp.dot(g_mean, mt, preferred_element_type=jnp.float32)
        xc = x - mean_c
        ch_sq = jnp.sum(xc * xc, axis=0, keepdims=True)
        g_var = jnp.dot(ch_sq, m, preferred_element_type=jnp.float32) * inv_n
        var_c = jnp.dot(g_var, mt, preferred_element_type=jnp.float32)
        y = xc * jax.lax.rsqrt(var_c + eps)
    y = y * g_ref[...].astype(jnp.float32) + b_ref[...].astype(jnp.float32)
    if swish:
        y = y * jax.nn.sigmoid(y)
    o_ref[0] = y.astype(o_ref.dtype)


def _conv3x3_kernel(x_ref, w_ref, b_ref, *rest, H, W, Cin, Cout, add_residual):
    """3x3 / stride-1 conv on a pre-padded image, + bias (+ fused residual).

    x_ref: (1, H+2, W+2, Cin); w_ref: (9, Cin, Cout); b_ref: (1, Cout);
    [res_ref: (1, H*W, Cout)]; o_ref: (1, H*W, Cout).
    """
    if add_residual:
        res_ref, o_ref = rest
    else:
        (o_ref,) = rest
    acc = jnp.zeros((H * W, Cout), jnp.float32)
    for kh in range(3):
        for kw in range(3):
            patch = x_ref[0, kh:kh + H, kw:kw + W, :].astype(jnp.float32)
            acc = acc + jnp.dot(patch.reshape(H * W, Cin),
                                w_ref[kh * 3 + kw].astype(jnp.float32),
                                preferred_element_type=jnp.float32)
    acc = acc + b_ref[...].astype(jnp.float32)
    if add_residual:
        acc = acc + res_ref[0].astype(jnp.float32)
    o_ref[0] = acc.astype(o_ref.dtype)


def _conv1x1_kernel(x_ref, w_ref, b_ref, *rest, add_residual):
    if add_residual:
        res_ref, o_ref = rest
    else:
        (o_ref,) = rest
    y = jnp.dot(x_ref[0].astype(jnp.float32), w_ref[...].astype(jnp.float32),
                preferred_element_type=jnp.float32)
    y = y + b_ref[...].astype(jnp.float32)
    if add_residual:
        y = y + res_ref[0].astype(jnp.float32)
    o_ref[0] = y.astype(o_ref.dtype)


def _attn_kernel(x_ref, h_ref, wq_ref, bq_ref, wk_ref, bk_ref, wv_ref, bv_ref,
                 wp_ref, bp_ref, o_ref, *, scale):
    """Fused AttnBlock core for one image: qkv + softmax attn + proj + resid."""
    h = h_ref[0].astype(jnp.float32)                              # (T, C)
    q = jnp.dot(h, wq_ref[...], preferred_element_type=jnp.float32) + bq_ref[...]
    k = jnp.dot(h, wk_ref[...], preferred_element_type=jnp.float32) + bk_ref[...]
    v = jnp.dot(h, wv_ref[...], preferred_element_type=jnp.float32) + bv_ref[...]
    logits = jax.lax.dot_general(
        q, k, (((1,), (1,)), ((), ())),
        preferred_element_type=jnp.float32) * scale               # (T, T)
    m = jnp.max(logits, axis=-1, keepdims=True)
    e = jnp.exp(logits - m)
    p = e / jnp.sum(e, axis=-1, keepdims=True)
    hv = jnp.dot(p, v, preferred_element_type=jnp.float32)        # (T, C)
    out = x_ref[0].astype(jnp.float32)
    out = out + jnp.dot(hv, wp_ref[...], preferred_element_type=jnp.float32)
    out = out + bp_ref[...]
    o_ref[0] = out.astype(o_ref.dtype)


def _nearest2x_kernel(x_ref, o_ref):
    """Nearest-neighbour 2x upsample, phase-major output.
    x_ref: (1, T, C); o_ref: (1, 2, 2, T, C)."""
    x = x_ref[0]
    for a in range(2):
        for b in range(2):
            o_ref[0, a, b] = x


def _upsample_conv_kernel(x_ref, w_ref, b_ref, o_ref, *, H, W, Cin, Cout):
    """Fused nearest-2x + conv3x3(pad=1) evaluated on the LOW-RES image.

    x_ref: (1, H+2, W+2, Cin) padded low-res input
    w_ref: (4, 4, Cin, Cout)  effective 2x2 weights per output parity phase
    b_ref: (1, Cout);  o_ref: (1, 2, 2, H*W, Cout) phase-major output.
    """
    bias = b_ref[...].astype(jnp.float32)
    for pa in range(2):
        for pb in range(2):
            acc = jnp.zeros((H * W, Cout), jnp.float32)
            for r in range(2):
                for s in range(2):
                    patch = x_ref[0, pa + r:pa + r + H, pb + s:pb + s + W, :]
                    acc = acc + jnp.dot(
                        patch.astype(jnp.float32).reshape(H * W, Cin),
                        w_ref[2 * pa + pb, 2 * r + s].astype(jnp.float32),
                        preferred_element_type=jnp.float32)
            o_ref[0, pa, pb] = (acc + bias).astype(o_ref.dtype)


# --------------------------- pallas_call wrappers ---------------------------

@functools.partial(jax.jit, static_argnames=("groups", "eps", "swish"))
def group_norm(x, gamma, beta, *, groups, eps=1e-6, swish=False):
    """GroupNorm (+ optional SiLU) on NHWC input."""
    N, H, W, C = x.shape
    T = H * W
    cg = C // groups
    kernel = functools.partial(_gn_swish_kernel, groups=groups, cg=cg,
                               eps=eps, swish=swish)
    in_specs = [
        pl.BlockSpec((1, T, C), lambda n: (n, 0, 0)),
        pl.BlockSpec((1, C), lambda n: (0, 0)),
        pl.BlockSpec((1, C), lambda n: (0, 0)),
    ]
    args = [x.reshape(N, T, C), gamma.reshape(1, C), beta.reshape(1, C)]
    if groups > 1:
        gid = jnp.arange(C) // cg
        m = (gid[:, None] == jnp.arange(groups)[None, :]).astype(jnp.float32)
        in_specs += [pl.BlockSpec((C, groups), lambda n: (0, 0)),
                     pl.BlockSpec((groups, C), lambda n: (0, 0))]
        args += [m, m.T]
    out = pl.pallas_call(
        kernel,
        out_shape=jax.ShapeDtypeStruct((N, T, C), x.dtype),
        grid=(N,),
        in_specs=in_specs,
        out_specs=pl.BlockSpec((1, T, C), lambda n: (n, 0, 0)),
        compiler_params=_PARALLEL_1D,
    )(*args)
    return out.reshape(N, H, W, C)


@jax.jit
def conv3x3(x, w_oihw, b, residual=None):
    """3x3 / stride-1 / pad-1 conv + bias (+ fused residual add), NHWC."""
    N, H, W, Cin = x.shape
    Cout = w_oihw.shape[0]
    T = H * W
    xp = jnp.pad(x, ((0, 0), (1, 1), (1, 1), (0, 0)))
    w = jnp.transpose(w_oihw, (2, 3, 1, 0)).reshape(9, Cin, Cout)
    add_res = residual is not None
    kernel = functools.partial(_conv3x3_kernel, H=H, W=W, Cin=Cin, Cout=Cout,
                               add_residual=add_res)
    in_specs = [
        pl.BlockSpec((1, H + 2, W + 2, Cin), lambda n: (n, 0, 0, 0)),
        pl.BlockSpec((9, Cin, Cout), lambda n: (0, 0, 0)),
        pl.BlockSpec((1, Cout), lambda n: (0, 0)),
    ]
    args = [xp, w, b.reshape(1, Cout)]
    if add_res:
        in_specs.append(pl.BlockSpec((1, T, Cout), lambda n: (n, 0, 0)))
        args.append(residual.reshape(N, T, Cout))
    out = pl.pallas_call(
        kernel,
        out_shape=jax.ShapeDtypeStruct((N, T, Cout), x.dtype),
        grid=(N,),
        in_specs=in_specs,
        out_specs=pl.BlockSpec((1, T, Cout), lambda n: (n, 0, 0)),
        compiler_params=_PARALLEL_1D,
    )(*args)
    return out.reshape(N, H, W, Cout)


@jax.jit
def conv1x1(x, w_oihw, b, residual=None):
    N, H, W, Cin = x.shape
    Cout = w_oihw.shape[0]
    T = H * W
    w = jnp.transpose(w_oihw.reshape(Cout, Cin), (1, 0))
    add_res = residual is not None
    kernel = functools.partial(_conv1x1_kernel, add_residual=add_res)
    in_specs = [
        pl.BlockSpec((1, T, Cin), lambda n: (n, 0, 0)),
        pl.BlockSpec((Cin, Cout), lambda n: (0, 0)),
        pl.BlockSpec((1, Cout), lambda n: (0, 0)),
    ]
    args = [x.reshape(N, T, Cin), w, b.reshape(1, Cout)]
    if add_res:
        in_specs.append(pl.BlockSpec((1, T, Cout), lambda n: (n, 0, 0)))
        args.append(residual.reshape(N, T, Cout))
    out = pl.pallas_call(
        kernel,
        out_shape=jax.ShapeDtypeStruct((N, T, Cout), x.dtype),
        grid=(N,),
        in_specs=in_specs,
        out_specs=pl.BlockSpec((1, T, Cout), lambda n: (n, 0, 0)),
        compiler_params=_PARALLEL_1D,
    )(*args)
    return out.reshape(N, H, W, Cout)


@jax.jit
def nearest_upsample2x(x):
    """F.interpolate(scale_factor=2, mode='nearest') on NHWC."""
    N, H, W, C = x.shape
    T = H * W
    out = pl.pallas_call(
        _nearest2x_kernel,
        out_shape=jax.ShapeDtypeStruct((N, 2, 2, T, C), x.dtype),
        grid=(N,),
        in_specs=[pl.BlockSpec((1, T, C), lambda n: (n, 0, 0))],
        out_specs=pl.BlockSpec((1, 2, 2, T, C), lambda n: (n, 0, 0, 0, 0)),
        compiler_params=_PARALLEL_1D,
    )(x.reshape(N, T, C))
    out = out.reshape(N, 2, 2, H, W, C).transpose(0, 3, 1, 4, 2, 5)
    return out.reshape(N, 2 * H, 2 * W, C)


# For nearest-2x followed by a 3x3/pad-1 conv, the taps collapse per output
# parity onto a 2x2 neighbourhood of the low-res image with summed weights.
_UPCONV_TAPS = (((0,), (1, 2)), ((0, 1), (2,)))   # [parity][tap] -> kh indices


@jax.jit
def upsample_conv(x, w_oihw, b):
    """Fused Upsample(with_conv=True): nearest 2x + conv3x3(pad=1) + bias."""
    N, H, W, Cin = x.shape
    Cout = w_oihw.shape[0]
    T = H * W
    xp = jnp.pad(x, ((0, 0), (1, 1), (1, 1), (0, 0)))
    wk = jnp.transpose(w_oihw, (2, 3, 1, 0))                 # (3, 3, Cin, Cout)
    planes = []
    for pa in range(2):
        for pb in range(2):
            taps = []
            for r in range(2):
                for s in range(2):
                    wsum = None
                    for kh in _UPCONV_TAPS[pa][r]:
                        for kw in _UPCONV_TAPS[pb][s]:
                            t = wk[kh, kw]
                            wsum = t if wsum is None else wsum + t
                    taps.append(wsum)
            planes.append(jnp.stack(taps, axis=0))
    weff = jnp.stack(planes, axis=0)                         # (4, 4, Cin, Cout)
    kernel = functools.partial(_upsample_conv_kernel, H=H, W=W, Cin=Cin,
                               Cout=Cout)
    out = pl.pallas_call(
        kernel,
        out_shape=jax.ShapeDtypeStruct((N, 2, 2, T, Cout), x.dtype),
        grid=(N,),
        in_specs=[
            pl.BlockSpec((1, H + 2, W + 2, Cin), lambda n: (n, 0, 0, 0)),
            pl.BlockSpec((4, 4, Cin, Cout), lambda n: (0, 0, 0, 0)),
            pl.BlockSpec((1, Cout), lambda n: (0, 0)),
        ],
        out_specs=pl.BlockSpec((1, 2, 2, T, Cout), lambda n: (n, 0, 0, 0, 0)),
        compiler_params=_PARALLEL_1D,
    )(xp, weff, b.reshape(1, Cout))
    out = out.reshape(N, 2, 2, H, W, Cout).transpose(0, 3, 1, 4, 2, 5)
    return out.reshape(N, 2 * H, 2 * W, Cout)


@jax.jit
def _attn_apply(x_flat, h_flat, wq, bq, wk, bk, wv, bv, wp, bp):
    N, T, C = x_flat.shape

    def wio(w):                      # torch (Cout, Cin, 1, 1) -> (Cin, Cout)
        return jnp.transpose(w.reshape(C, C), (1, 0))

    def b2(v):
        return v.reshape(1, C)

    kernel = functools.partial(_attn_kernel, scale=float(C) ** (-0.5))
    mat_spec = pl.BlockSpec((C, C), lambda n: (0, 0))
    vec_spec = pl.BlockSpec((1, C), lambda n: (0, 0))
    tok_spec = pl.BlockSpec((1, T, C), lambda n: (n, 0, 0))
    return pl.pallas_call(
        kernel,
        out_shape=jax.ShapeDtypeStruct((N, T, C), x_flat.dtype),
        grid=(N,),
        in_specs=[tok_spec, tok_spec,
                  mat_spec, vec_spec, mat_spec, vec_spec,
                  mat_spec, vec_spec, mat_spec, vec_spec],
        out_specs=tok_spec,
        compiler_params=_PARALLEL_1D,
    )(x_flat, h_flat, wio(wq), b2(bq), wio(wk), b2(bk),
      wio(wv), b2(bv), wio(wp), b2(bp))


# ----------------------------- module composition ---------------------------

def resnet_block(x, p):
    """ResnetBlock with temb_channels=0 and dropout=0."""
    cin = p["conv1"]["w"].shape[1]
    cout = p["conv1"]["w"].shape[0]
    h = group_norm(x, p["norm1"]["g"], p["norm1"]["b"],
                   groups=norm_num_groups(cin), swish=True)
    h = conv3x3(h, p["conv1"]["w"], p["conv1"]["b"])
    h = group_norm(h, p["norm2"]["g"], p["norm2"]["b"],
                   groups=norm_num_groups(cout), swish=True)
    shortcut = x if cin == cout else conv1x1(x, p["nin"]["w"], p["nin"]["b"])
    return conv3x3(h, p["conv2"]["w"], p["conv2"]["b"], residual=shortcut)


def attn_block(x, p):
    N, H, W, C = x.shape
    h = group_norm(x, p["norm"]["g"], p["norm"]["b"],
                   groups=norm_num_groups(C), swish=False)
    out = _attn_apply(x.reshape(N, H * W, C), h.reshape(N, H * W, C),
                      p["q"]["w"], p["q"]["b"], p["k"]["w"], p["k"]["b"],
                      p["v"]["w"], p["v"]["b"], p["proj"]["w"], p["proj"]["b"])
    return out.reshape(N, H, W, C)


def upsampler_forward(params, x_nchw, factor_up):
    """Pallas forward for Upsampler (NCHW in / NCHW out)."""
    x = jnp.transpose(x_nchw, (0, 2, 3, 1))                  # NHWC internally

    # ---- LatentRescaler ----
    rp = params["rescaler"]
    h = conv3x3(x, rp["conv_in"]["w"], rp["conv_in"]["b"])
    for bp in rp["res_block1"]:
        h = resnet_block(h, bp)
    if factor_up != 1.0:
        if factor_up == 2.0:
            h = nearest_upsample2x(h)
        else:
            # TODO(synk): general (non-2x) nearest resize for arbitrary
            # out_size/in_size ratios in LatentRescaler.
            raise NotImplementedError("only factor_up in {1.0, 2.0} supported")
    h = attn_block(h, rp["attn"])
    for bp in rp["res_block2"]:
        h = resnet_block(h, bp)
    h = conv1x1(h, rp["conv_out"]["w"], rp["conv_out"]["b"])

    # ---- Decoder ----
    dp = params["decoder"]
    h = conv3x3(h, dp["conv_in"]["w"], dp["conv_in"]["b"])
    h = resnet_block(h, dp["mid_block_1"])
    h = attn_block(h, dp["mid_attn_1"])
    h = resnet_block(h, dp["mid_block_2"])
    for i_level in reversed(range(len(dp["up"]))):
        lvl = dp["up"][i_level]
        for bp in lvl["blocks"]:
            h = resnet_block(h, bp)
        if i_level != 0:
            h = upsample_conv(h, lvl["upsample"]["w"], lvl["upsample"]["b"])
    h = group_norm(h, dp["norm_out"]["g"], dp["norm_out"]["b"],
                   groups=norm_num_groups(h.shape[-1]), swish=True)
    h = conv3x3(h, dp["conv_out"]["w"], dp["conv_out"]["b"])
    return jnp.transpose(h, (0, 3, 1, 2))                    # back to NCHW


# -------------------------------- parameters --------------------------------

def _conv_params(key, cin, cout, k):
    kw, kb = jax.random.split(key)
    fan_in = float(cin * k * k)
    return {"w": jax.random.normal(kw, (cout, cin, k, k), jnp.float32)
                 / fan_in ** 0.5,
            "b": 0.05 * jax.random.normal(kb, (cout,), jnp.float32)}


def _norm_params(key, c):
    kg, kb = jax.random.split(key)
    return {"g": 1.0 + 0.1 * jax.random.normal(kg, (c,), jnp.float32),
            "b": 0.1 * jax.random.normal(kb, (c,), jnp.float32)}


def _resblock_params(key, cin, cout):
    k1, k2, k3, k4, k5 = jax.random.split(key, 5)
    p = {"norm1": _norm_params(k1, cin), "conv1": _conv_params(k2, cin, cout, 3),
         "norm2": _norm_params(k3, cout), "conv2": _conv_params(k4, cout, cout, 3)}
    if cin != cout:
        p["nin"] = _conv_params(k5, cin, cout, 1)
    return p


def _attn_params(key, c):
    k1, k2, k3, k4, k5 = jax.random.split(key, 5)
    return {"norm": _norm_params(k1, c), "q": _conv_params(k2, c, c, 1),
            "k": _conv_params(k3, c, c, 1), "v": _conv_params(k4, c, c, 1),
            "proj": _conv_params(k5, c, c, 1)}


def make_upsampler_params(key, in_size, out_size, in_channels, out_channels,
                          ch_mult=2):
    assert out_size >= in_size
    num_blocks = (int(math.log2(out_size // in_size)) + 1
                  if out_size > in_size else 1)
    factor_up = float(out_size) / in_size
    mid = (in_channels * ch_mult
           if (factor_up > 1.0 and ch_mult > 0) else in_channels)
    kit = iter(jax.random.split(key, 64))

    rescaler = {
        "conv_in": _conv_params(next(kit), in_channels, mid, 3),
        "res_block1": [_resblock_params(next(kit), mid, mid)],      # depth = 1
        "attn": _attn_params(next(kit), mid),
        "res_block2": [_resblock_params(next(kit), mid, mid)],
        "conv_out": _conv_params(next(kit), mid, in_channels, 1),
    }

    ch = in_channels
    ch_mult_list = [ch_mult] * num_blocks
    num_res_blocks = 2
    block_in = ch * ch_mult_list[-1]
    decoder = {
        "conv_in": _conv_params(next(kit), in_channels, block_in, 3),
        "mid_block_1": _resblock_params(next(kit), block_in, block_in),
        "mid_attn_1": _attn_params(next(kit), block_in),
        "mid_block_2": _resblock_params(next(kit), block_in, block_in),
    }
    cur = block_in
    up = [None] * num_blocks
    for i_level in reversed(range(num_blocks)):
        block_out = ch * ch_mult_list[i_level]
        blocks = []
        for _ in range(num_res_blocks + 1):
            blocks.append(_resblock_params(next(kit), cur, block_out))
            cur = block_out
        lvl = {"blocks": blocks}
        if i_level != 0:
            lvl["upsample"] = _conv_params(next(kit), cur, cur, 3)
        up[i_level] = lvl
    decoder["up"] = up
    decoder["norm_out"] = _norm_params(next(kit), cur)
    decoder["conv_out"] = _conv_params(next(kit), cur, out_channels, 3)

    return {"rescaler": rescaler, "decoder": decoder}, factor_up


# ----------------------- pure-JAX reference (checking) ----------------------

_HI = jax.lax.Precision.HIGHEST


def _ref_conv(x, w_oihw, b, pad):
    w = jnp.transpose(w_oihw, (2, 3, 1, 0))                  # HWIO
    y = jax.lax.conv_general_dilated(
        x, w, (1, 1), ((pad, pad), (pad, pad)),
        dimension_numbers=("NHWC", "HWIO", "NHWC"), precision=_HI)
    return y + b.reshape(1, 1, 1, -1)


def _ref_gn(x, g, b, groups, eps=1e-6):
    N, H, W, C = x.shape
    xg = x.reshape(N, H * W, groups, C // groups)
    m = jnp.mean(xg, axis=(1, 3), keepdims=True)
    v = jnp.mean((xg - m) ** 2, axis=(1, 3), keepdims=True)
    xn = ((xg - m) / jnp.sqrt(v + eps)).reshape(N, H, W, C)
    return xn * g.reshape(1, 1, 1, C) + b.reshape(1, 1, 1, C)


def _ref_swish(x):
    return x * jax.nn.sigmoid(x)


def _ref_resblock(x, p):
    cin = p["conv1"]["w"].shape[1]
    cout = p["conv1"]["w"].shape[0]
    h = _ref_swish(_ref_gn(x, p["norm1"]["g"], p["norm1"]["b"],
                           norm_num_groups(cin)))
    h = _ref_conv(h, p["conv1"]["w"], p["conv1"]["b"], 1)
    h = _ref_swish(_ref_gn(h, p["norm2"]["g"], p["norm2"]["b"],
                           norm_num_groups(cout)))
    h = _ref_conv(h, p["conv2"]["w"], p["conv2"]["b"], 1)
    if cin != cout:
        x = _ref_conv(x, p["nin"]["w"], p["nin"]["b"], 0)
    return x + h


def _ref_attn(x, p):
    N, H, W, C = x.shape
    h = _ref_gn(x, p["norm"]["g"], p["norm"]["b"], norm_num_groups(C))
    q = _ref_conv(h, p["q"]["w"], p["q"]["b"], 0).reshape(N, H * W, C)
    k = _ref_conv(h, p["k"]["w"], p["k"]["b"], 0).reshape(N, H * W, C)
    v = _ref_conv(h, p["v"]["w"], p["v"]["b"], 0).reshape(N, H * W, C)
    logits = jnp.einsum("ntc,nsc->nts", q, k, precision=_HI) * (float(C) ** -0.5)
    a = jax.nn.softmax(logits, axis=2)
    hv = jnp.einsum("nts,nsc->ntc", a, v, precision=_HI).reshape(N, H, W, C)
    return x + _ref_conv(hv, p["proj"]["w"], p["proj"]["b"], 0)


def _ref_upsample2x(x):
    return jnp.repeat(jnp.repeat(x, 2, axis=1), 2, axis=2)


def upsampler_forward_ref(params, x_nchw, factor_up):
    x = jnp.transpose(x_nchw, (0, 2, 3, 1))
    rp = params["rescaler"]
    h = _ref_conv(x, rp["conv_in"]["w"], rp["conv_in"]["b"], 1)
    for bp in rp["res_block1"]:
        h = _ref_resblock(h, bp)
    if factor_up != 1.0:
        h = _ref_upsample2x(h)
    h = _ref_attn(h, rp["attn"])
    for bp in rp["res_block2"]:
        h = _ref_resblock(h, bp)
    h = _ref_conv(h, rp["conv_out"]["w"], rp["conv_out"]["b"], 0)
    dp = params["decoder"]
    h = _ref_conv(h, dp["conv_in"]["w"], dp["conv_in"]["b"], 1)
    h = _ref_resblock(h, dp["mid_block_1"])
    h = _ref_attn(h, dp["mid_attn_1"])
    h = _ref_resblock(h, dp["mid_block_2"])
    for i_level in reversed(range(len(dp["up"]))):
        lvl = dp["up"][i_level]
        for bp in lvl["blocks"]:
            h = _ref_resblock(h, bp)
        if i_level != 0:
            h = _ref_conv(_ref_upsample2x(h), lvl["upsample"]["w"],
                          lvl["upsample"]["b"], 1)
    h = _ref_swish(_ref_gn(h, dp["norm_out"]["g"], dp["norm_out"]["b"],
                           norm_num_groups(h.shape[-1])))
    h = _ref_conv(h, dp["conv_out"]["w"], dp["conv_out"]["b"], 1)
    return jnp.transpose(h, (0, 3, 1, 2))


# ------------------------------------ main ----------------------------------

if __name__ == "__main__":
    key = jax.random.PRNGKey(0)
    kp, kx = jax.random.split(key)

    # Upsampler(in_size=8, out_size=16, in_channels=4, out_channels=3, ch_mult=2)
    N, in_channels, out_channels = 2, 4, 3
    in_size, out_size, ch_mult = 8, 16, 2

    params, factor_up = make_upsampler_params(
        kp, in_size, out_size, in_channels, out_channels, ch_mult)
    x = jax.random.normal(kx, (N, in_channels, in_size, in_size), jnp.float32)

    y = upsampler_forward(params, x, factor_up)
    y = jax.block_until_ready(y)

    y_ref = upsampler_forward_ref(params, x, factor_up)
    y_ref = jax.block_until_ready(y_ref)

    assert y.shape == y_ref.shape, (y.shape, y_ref.shape)
    assert bool(jnp.all(jnp.isfinite(y)))
    err = float(jnp.max(jnp.abs(y - y_ref)))
    scale = float(jnp.max(jnp.abs(y_ref))) + 1e-6
    assert err / scale < 5e-2, (err, scale)

    print("KERNEL_OK")
</pallas_src>

<mosaic_0001>
module attributes {stable_mosaic.version = 11 : i64} {
  func.func @_conv3x3_kernel(%arg0: i32, %arg1: memref<1x10x10x4xf32, #tpu.memory_space<vmem>>, %arg2: memref<9x4x8xf32, #tpu.memory_space<vmem>>, %arg3: memref<1x8xf32, #tpu.memory_space<vmem>>, %arg4: memref<1x64x8xf32, #tpu.memory_space<vmem>>) attributes {dimension_semantics = [#tpu.dimension_semantics<parallel>], iteration_bounds = array<i64: 2>, scalar_prefetch = 0 : i64, scratch_operands = 0 : i64, tpu.core_type = #tpu.core_type<tc>, window_params = [{transform_indices = @transform_0, window_bounds = array<i64: 1, 10, 10, 4>}, {pipeline_mode = #tpu.pipeline_mode<synchronous>, transform_indices = @transform_1, window_bounds = array<i64: 9, 4, 8>}, {pipeline_mode = #tpu.pipeline_mode<synchronous>, transform_indices = @transform_2, window_bounds = array<i64: 1, 8>}, {transform_indices = @transform_3, window_bounds = array<i64: 1, 64, 8>}]} {
    %cst = arith.constant 0.000000e+00 : f32
    %0 = vector.broadcast %cst : f32 to vector<64x8xf32>
    %c0 = arith.constant 0 : index
    %c0_0 = arith.constant 0 : index
    %c0_1 = arith.constant 0 : index
    %c0_2 = arith.constant 0 : index
    %1 = vector.load %arg1[%c0, %c0_0, %c0_1, %c0_2] : memref<1x10x10x4xf32, #tpu.memory_space<vmem>>, vector<1x8x8x4xf32>
    %2 = vector.shape_cast %1 : vector<1x8x8x4xf32> to vector<8x8x4xf32>
    %3 = vector.shape_cast %2 : vector<8x8x4xf32> to vector<64x4xf32>
    %c0_3 = arith.constant 0 : index
    %c0_4 = arith.constant 0 : index
    %c0_5 = arith.constant 0 : index
    %4 = vector.load %arg2[%c0_3, %c0_4, %c0_5] : memref<9x4x8xf32, #tpu.memory_space<vmem>>, vector<1x4x8xf32>
    %5 = vector.shape_cast %4 : vector<1x4x8xf32> to vector<4x8xf32>
    %cst_6 = arith.constant dense<0.000000e+00> : vector<64x8xf32>
    %6 = tpu.matmul %3, %5, %cst_6 {dimension_numbers = #tpu.dot_dimension_numbers<[1], [0], [0], [1], [0, 0, 1, 1], [], []>} : vector<64x4xf32>, vector<4x8xf32>, vector<64x8xf32> -> vector<64x8xf32>
    %7 = arith.addf %0, %6 : vector<64x8xf32>
    %c0_7 = arith.constant 0 : index
    %c0_8 = arith.constant 0 : index
    %c1 = arith.constant 1 : index
    %c0_9 = arith.constant 0 : index
    %8 = vector.load %arg1[%c0_7, %c0_8, %c1, %c0_9] : memref<1x10x10x4xf32, #tpu.memory_space<vmem>>, vector<1x8x8x4xf32>
    %9 = vector.shape_cast %8 : vector<1x8x8x4xf32> to vector<8x8x4xf32>
    %10 = vector.shape_cast %9 : vector<8x8x4xf32> to vector<64x4xf32>
    %c1_10 = arith.constant 1 : index
    %c0_11 = arith.constant 0 : index
    %c0_12 = arith.constant 0 : index
    %11 = vector.load %arg2[%c1_10, %c0_11, %c0_12] : memref<9x4x8xf32, #tpu.memory_space<vmem>>, vector<1x4x8xf32>
    %12 = vector.shape_cast %11 : vector<1x4x8xf32> to vector<4x8xf32>
    %cst_13 = arith.constant dense<0.000000e+00> : vector<64x8xf32>
    %13 = tpu.matmul %10, %12, %cst_13 {dimension_numbers = #tpu.dot_dimension_numbers<[1], [0], [0], [1], [0, 0, 1, 1], [], []>} : vector<64x4xf32>, vector<4x8xf32>, vector<64x8xf32> -> vector<64x8xf32>
    %14 = arith.addf %7, %13 : vector<64x8xf32>
    %c0_14 = arith.constant 0 : index
    %c0_15 = arith.constant 0 : index
    %c2 = arith.constant 2 : index
    %c0_16 = arith.constant 0 : index
    %15 = vector.load %arg1[%c0_14, %c0_15, %c2, %c0_16] : memref<1x10x10x4xf32, #tpu.memory_space<vmem>>, vector<1x8x8x4xf32>
    %16 = vector.shape_cast %15 : vector<1x8x8x4xf32> to vector<8x8x4xf32>
    %17 = vector.shape_cast %16 : vector<8x8x4xf32> to vector<64x4xf32>
    %c2_17 = arith.constant 2 : index
    %c0_18 = arith.constant 0 : index
    %c0_19 = arith.constant 0 : index
    %18 = vector.load %arg2[%c2_17, %c0_18, %c0_19] : memref<9x4x8xf32, #tpu.memory_space<vmem>>, vector<1x4x8xf32>
    %19 = vector.shape_cast %18 : vector<1x4x8xf32> to vector<4x8xf32>
    %cst_20 = arith.constant dense<0.000000e+00> : vector<64x8xf32>
    %20 = tpu.matmul %17, %19, %cst_20 {dimension_numbers = #tpu.dot_dimension_numbers<[1], [0], [0], [1], [0, 0, 1, 1], [], []>} : vector<64x4xf32>, vector<4x8xf32>, vector<64x8xf32> -> vector<64x8xf32>
    %21 = arith.addf %14, %20 : vector<64x8xf32>
    %c0_21 = arith.constant 0 : index
    %c1_22 = arith.constant 1 : index
    %c0_23 = arith.constant 0 : index
    %c0_24 = arith.constant 0 : index
    %22 = vector.load %arg1[%c0_21, %c1_22, %c0_23, %c0_24] : memref<1x10x10x4xf32, #tpu.memory_space<vmem>>, vector<1x8x8x4xf32>
    %23 = vector.shape_cast %22 : vector<1x8x8x4xf32> to vector<8x8x4xf32>
    %24 = vector.shape_cast %23 : vector<8x8x4xf32> to vector<64x4xf32>
    %c3 = arith.constant 3 : index
    %c0_25 = arith.constant 0 : index
    %c0_26 = arith.constant 0 : index
    %25 = vector.load %arg2[%c3, %c0_25, %c0_26] : memref<9x4x8xf32, #tpu.memory_space<vmem>>, vector<1x4x8xf32>
    %26 = vector.shape_cast %25 : vector<1x4x8xf32> to vector<4x8xf32>
    %cst_27 = arith.constant dense<0.000000e+00> : vector<64x8xf32>
    %27 = tpu.matmul %24, %26, %cst_27 {dimension_numbers = #tpu.dot_dimension_numbers<[1], [0], [0], [1], [0, 0, 1, 1], [], []>} : vector<64x4xf32>, vector<4x8xf32>, vector<64x8xf32> -> vector<64x8xf32>
    %28 = arith.addf %21, %27 : vector<64x8xf32>
    %c0_28 = arith.constant 0 : index
    %c1_29 = arith.constant 1 : index
    %c1_30 = arith.constant 1 : index
    %c0_31 = arith.constant 0 : index
    %29 = vector.load %arg1[%c0_28, %c1_29, %c1_30, %c0_31] : memref<1x10x10x4xf32, #tpu.memory_space<vmem>>, vector<1x8x8x4xf32>
    %30 = vector.shape_cast %29 : vector<1x8x8x4xf32> to vector<8x8x4xf32>
    %31 = vector.shape_cast %30 : vector<8x8x4xf32> to vector<64x4xf32>
    %c4 = arith.constant 4 : index
    %c0_32 = arith.constant 0 : index
    %c0_33 = arith.constant 0 : index
    %32 = vector.load %arg2[%c4, %c0_32, %c0_33] : memref<9x4x8xf32, #tpu.memory_space<vmem>>, vector<1x4x8xf32>
    %33 = vector.shape_cast %32 : vector<1x4x8xf32> to vector<4x8xf32>
    %cst_34 = arith.constant dense<0.000000e+00> : vector<64x8xf32>
    %34 = tpu.matmul %31, %33, %cst_34 {dimension_numbers = #tpu.dot_dimension_numbers<[1], [0], [0], [1], [0, 0, 1, 1], [], []>} : vector<64x4xf32>, vector<4x8xf32>, vector<64x8xf32> -> vector<64x8xf32>
    %35 = arith.addf %28, %34 : vector<64x8xf32>
    %c0_35 = arith.constant 0 : index
    %c1_36 = arith.constant 1 : index
    %c2_37 = arith.constant 2 : index
    %c0_38 = arith.constant 0 : index
    %36 = vector.load %arg1[%c0_35, %c1_36, %c2_37, %c0_38] : memref<1x10x10x4xf32, #tpu.memory_space<vmem>>, vector<1x8x8x4xf32>
    %37 = vector.shape_cast %36 : vector<1x8x8x4xf32> to vector<8x8x4xf32>
    %38 = vector.shape_cast %37 : vector<8x8x4xf32> to vector<64x4xf32>
    %c5 = arith.constant 5 : index
    %c0_39 = arith.constant 0 : index
    %c0_40 = arith.constant 0 : index
    %39 = vector.load %arg2[%c5, %c0_39, %c0_40] : memref<9x4x8xf32, #tpu.memory_space<vmem>>, vector<1x4x8xf32>
    %40 = vector.shape_cast %39 : vector<1x4x8xf32> to vector<4x8xf32>
    %cst_41 = arith.constant dense<0.000000e+00> : vector<64x8xf32>
    %41 = tpu.matmul %38, %40, %cst_41 {dimension_numbers = #tpu.dot_dimension_numbers<[1], [0], [0], [1], [0, 0, 1, 1], [], []>} : vector<64x4xf32>, vector<4x8xf32>, vector<64x8xf32> -> vector<64x8xf32>
    %42 = arith.addf %35, %41 : vector<64x8xf32>
    %c0_42 = arith.constant 0 : index
    %c2_43 = arith.constant 2 : index
    %c0_44 = arith.constant 0 : index
    %c0_45 = arith.constant 0 : index
    %43 = vector.load %arg1[%c0_42, %c2_43, %c0_44, %c0_45] : memref<1x10x10x4xf32, #tpu.memory_space<vmem>>, vector<1x8x8x4xf32>
    %44 = vector.shape_cast %43 : vector<1x8x8x4xf32> to vector<8x8x4xf32>
    %45 = vector.shape_cast %44 : vector<8x8x4xf32> to vector<64x4xf32>
    %c6 = arith.constant 6 : index
    %c0_46 = arith.constant 0 : index
    %c0_47 = arith.constant 0 : index
    %46 = vector.load %arg2[%c6, %c0_46, %c0_47] : memref<9x4x8xf32, #tpu.memory_space<vmem>>, vector<1x4x8xf32>
    %47 = vector.shape_cast %46 : vector<1x4x8xf32> to vector<4x8xf32>
    %cst_48 = arith.constant dense<0.000000e+00> : vector<64x8xf32>
    %48 = tpu.matmul %45, %47, %cst_48 {dimension_numbers = #tpu.dot_dimension_numbers<[1], [0], [0], [1], [0, 0, 1, 1], [], []>} : vector<64x4xf32>, vector<4x8xf32>, vector<64x8xf32> -> vector<64x8xf32>
    %49 = arith.addf %42, %48 : vector<64x8xf32>
    %c0_49 = arith.constant 0 : index
    %c2_50 = arith.constant 2 : index
    %c1_51 = arith.constant 1 : index
    %c0_52 = arith.constant 0 : index
    %50 = vector.load %arg1[%c0_49, %c2_50, %c1_51, %c0_52] : memref<1x10x10x4xf32, #tpu.memory_space<vmem>>, vector<1x8x8x4xf32>
    %51 = vector.shape_cast %50 : vector<1x8x8x4xf32> to vector<8x8x4xf32>
    %52 = vector.shape_cast %51 : vector<8x8x4xf32> to vector<64x4xf32>
    %c7 = arith.constant 7 : index
    %c0_53 = arith.constant 0 : index
    %c0_54 = arith.constant 0 : index
    %53 = vector.load %arg2[%c7, %c0_53, %c0_54] : memref<9x4x8xf32, #tpu.memory_space<vmem>>, vector<1x4x8xf32>
    %54 = vector.shape_cast %53 : vector<1x4x8xf32> to vector<4x8xf32>
    %cst_55 = arith.constant dense<0.000000e+00> : vector<64x8xf32>
    %55 = tpu.matmul %52, %54, %cst_55 {dimension_numbers = #tpu.dot_dimension_numbers<[1], [0], [0], [1], [0, 0, 1, 1], [], []>} : vector<64x4xf32>, vector<4x8xf32>, vector<64x8xf32> -> vector<64x8xf32>
    %56 = arith.addf %49, %55 : vector<64x8xf32>
    %c0_56 = arith.constant 0 : index
    %c2_57 = arith.constant 2 : index
    %c2_58 = arith.constant 2 : index
    %c0_59 = arith.constant 0 : index
    %57 = vector.load %arg1[%c0_56, %c2_57, %c2_58, %c0_59] : memref<1x10x10x4xf32, #tpu.memory_space<vmem>>, vector<1x8x8x4xf32>
    %58 = vector.shape_cast %57 : vector<1x8x8x4xf32> to vector<8x8x4xf32>
    %59 = vector.shape_cast %58 : vector<8x8x4xf32> to vector<64x4xf32>
    %c8 = arith.constant 8 : index
    %c0_60 = arith.constant 0 : index
    %c0_61 = arith.constant 0 : index
    %60 = vector.load %arg2[%c8, %c0_60, %c0_61] : memref<9x4x8xf32, #tpu.memory_space<vmem>>, vector<1x4x8xf32>
    %61 = vector.shape_cast %60 : vector<1x4x8xf32> to vector<4x8xf32>
    %cst_62 = arith.constant dense<0.000000e+00> : vector<64x8xf32>
    %62 = tpu.matmul %59, %61, %cst_62 {dimension_numbers = #tpu.dot_dimension_numbers<[1], [0], [0], [1], [0, 0, 1, 1], [], []>} : vector<64x4xf32>, vector<4x8xf32>, vector<64x8xf32> -> vector<64x8xf32>
    %63 = arith.addf %56, %62 : vector<64x8xf32>
    %c0_63 = arith.constant 0 : index
    %c0_64 = arith.constant 0 : index
    %64 = vector.load %arg3[%c0_63, %c0_64] : memref<1x8xf32, #tpu.memory_space<vmem>>, vector<1x8xf32>
    %65 = vector.broadcast %64 : vector<1x8xf32> to vector<64x8xf32>
    %66 = arith.addf %63, %65 : vector<64x8xf32>
    %c0_65 = arith.constant 0 : index
    %c0_66 = arith.constant 0 : index
    %c0_67 = arith.constant 0 : index
    %67 = vector.load %arg4[%c0_65, %c0_66, %c0_67] : memref<1x64x8xf32, #tpu.memory_space<vmem>>, vector<1x64x8xf32>
    %68 = vector.shape_cast %67 : vector<1x64x8xf32> to vector<64x8xf32>
    %69 = vector.shape_cast %66 : vector<64x8xf32> to vector<1x64x8xf32>
    tpu.vector_store %arg4[%c0_65, %c0_66, %c0_67], %69 {strides = array<i32>} : memref<1x64x8xf32, #tpu.memory_space<vmem>>, vector<1x64x8xf32>,
    return
  }
  func.func @transform_0(%arg0: i32) -> (i32, i32, i32, i32) {
    %c0_i32 = arith.constant 0 : i32
    %c0_i32_0 = arith.constant 0 : i32
    %c0_i32_1 = arith.constant 0 : i32
    %c0_i32_2 = arith.constant 0 : i32
    return %arg0, %c0_i32, %c0_i32_0, %c0_i32_1 : i32, i32, i32, i32
  }
  func.func @transform_1(%arg0: i32) -> (i32, i32, i32) {
    %c0_i32 = arith.constant 0 : i32
    %c0_i32_0 = arith.constant 0 : i32
    %c0_i32_1 = arith.constant 0 : i32
    %c0_i32_2 = arith.constant 0 : i32
    return %c0_i32, %c0_i32_0, %c0_i32_1 : i32, i32, i32
  }
  func.func @transform_2(%arg0: i32) -> (i32, i32) {
    %c0_i32 = arith.constant 0 : i32
    %c0_i32_0 = arith.constant 0 : i32
    %c0_i32_1 = arith.constant 0 : i32
    return %c0_i32, %c0_i32_0 : i32, i32
  }
  func.func @transform_3(%arg0: i32) -> (i32, i32, i32) {
    %c0_i32 = arith.constant 0 : i32
    %c0_i32_0 = arith.constant 0 : i32
    %c0_i32_1 = arith.constant 0 : i32
    return %arg0, %c0_i32, %c0_i32_0 : i32, i32, i32
  }
}

</mosaic_0001>

<bundles_post_ra>
// kernel: conv3x3.1
= control target key start
LH: loop header
LB: loop body
LE: loop exit
PB: predicated region body
PF: predicated region fallthrough
CT: control target
= control target key end

     0   :  { %8 = vsyncpa [#allocation3], 0  ;;  %s2508_s0 = inlined_call_operand.vmem [shape: f32[2,10,10,4], index: 0, kind: input, shape index: {}]   ;;  %s2509_s1 = inlined_call_operand.vmem [shape: f32[9,4,8], index: 1, kind: input, shape index: {}]   ;;  %s2510_s2 = inlined_call_operand.vmem [shape: f32[1,8], index: 2, kind: input, shape index: {}]   ;;  %s2511_s3 = inlined_call_operand.hbm [shape: f32[2,64,8], index: 3, kind: output, shape index: {}]  }
   0x1   :  { %10 = vsyncpa [#allocation3 + $0x1], 0  ;;  %s2158_s12 = smov 0   ;;  %s2160_s13 = smov 0  }
   0x2   :  { %s2162_s14 = smov 0   ;;  %s2164_s15 = smov 0  }
   0x3 LB: > { %s2179_s16 = sadd.s32 4294967295, %s2133_s15   ;;  %s1606_s17 = sadd.s32 4294967294, %s2133_s15   ;;  %s2133_s15 = sphi %s2164_s15, %s2517_s15   ;;  %s2129_s14 = sphi %s2162_s14, %s2516_s14   ;;  %s2125_s13 = sphi %s2160_s13, %s2515_s13   ;;  %s2121_s12 = sphi %s2158_s12, %s2514_s12  }
   0x4   : > { %s2183_s18 = sadd.s32 1, %s2133_s15   ;;  %s91_s19 = sadd.s32 1, %s2129_s14 }
   0x5   : > { %s88_s20 = ssub.s32 %s2133_s15, %s2183_s18  ;;  %p101_p0 = scmp.ne.s32.totalorder %s2129_s14, %s2125_s13 }
   0x6   : > { %p89_p1 = scmp.eq.s32.totalorder %s88_s20, 0  ;;  %p102_p2 = scmp.eq.s32.totalorder %s2179_s16, 1 }
   0x7   : > { %p107_p3 = scmp.ne.s32.totalorder %s2125_s13, %s2121_s12  ;;  %p108_p4 = scmp.eq.s32.totalorder %s1606_s17, 1 }
   0x8   : > { %s2194_s21 = scalar_select %p89_p1, %s2129_s14, %s91_s19  }
   0x9   : > { %p2196_p5 = por %p102_p2, %p101_p0  ;;  %p2200_p6 = por %p108_p4, %p107_p3 }
   0xa   : > { %p1609_p7 = scmp.ge.s32.totalorder %s2133_s15, 1  ;;  %p140_p8 = scmp.lt.s32.totalorder %s2133_s15, 3 }
   0xc   : > { %p141_p9 = pnand %p1609_p7, %p140_p8 }
   0xd   : > { %v1612_v0 = vld [vmem:[%s2509_s1 + $0x4] sm:$0xf] (!%p141_p9)  ;;  %vm213_vm0 = vcmask (!%p141_p9), 1043456   ;;  %v2212_v1 = vld [vmem:[%s2509_s1 + $0x10] sm:$0xf] (!%p141_p9)  ;;  %p164_p10 = scmp.lt.s32.totalorder (!%p141_p9), %s2179_s16, 1 }
   0xe   : > { %144 = sbr.rel (%p141_p9) target bundleno = 328 (0x148), region = 32  ;;  %1837 = vmatprep.subr.msk.mxu1 (!%p141_p9), %vm213_vm0, %v1612_v0  ;;  %1893 = vmatprep.subr.msk.mxu0 (!%p141_p9), %vm213_vm0, %v2212_v1  ;;  %v177_v2 = vld [vmem:[%s2509_s1] sm:$0xf] (!%p141_p9)  ;;  %v1685_v3 = vld [vmem:[%s2509_s1 + $0x14] sm:$0xf] (!%p141_p9)  ;;  %vm188_vm1 = vcmask (!%p141_p9), 31744  }
   0xf   : > { %1838 = vmatpush3.msk.msra.mxu1 (!%p141_p9), %vm213_vm0, %v1612_v0  ;;  %1894 = vmatpush3.msk.msra.mxu0 (!%p141_p9), %vm213_vm0, %v2212_v1  ;;  %v1703_v8 = vld [vmem:[%s2509_s1 + $0x18] sm:$0xf] (!%p141_p9)  ;;  %v1631_v9 = vld [vmem:[%s2509_s1 + $0x8] sm:$0xf] (!%p141_p9)  ;;  %v1721_v16 = vld [vmem:[%s2509_s1 + $0x1c] sm:$0xf] (!%p141_p9) }
  0x10   : > { %1851 = vmatprep.subr.msk.mxu1 (!%p141_p9), %vm213_vm0, %v177_v2  ;;  %1907 = vmatprep.subr.msk.mxu0 (!%p141_p9), %vm213_vm0, %v1685_v3  ;;  %v1649_v25 = vld [vmem:[%s2509_s1 + $0xc] sm:$0xf] (!%p141_p9)  ;;  %v1739_v31 = vld [vmem:[%s2509_s1 + $0x20] sm:$0xf] (!%p141_p9)  ;;  %s161_s29 = sand.u32 (!%p141_p9), 1, %s2125_s13   ;;  %vm1521_vm2 = vcmask (!%p141_p9), 64512  }
  0x11   : > { %s1610_s30 = sshll.u32 (!%p141_p9), %s161_s29, 6  ;;  %v1749_v44 = vld [vmem:[%s2510_s2] ss:$0 sm:$0xff] (!%p141_p9)  ;;  %s1755_s7 = sshll.u32 (!%p141_p9), %s2179_s16, 10 }
  0x12   : > { %s2457_s11 = scalar_lea.hbm (!%p141_p9), %s2511_s3, %s1755_s7  ;;  %s2135_s19 = smov (!%p141_p9), [#allocation2]  }
  0x13   : > { %s2075_s20 = sshll.u32 (!%p141_p9), %s2135_s19, 4  ;;  %s2076_s20 = int_to_ptr.vmem [resolvable:$false] %s2075_s20 }
  0x14   : > { %s2077_s24 = scalar_lea.vmem (!%p141_p9), %s2076_s20, 2048 }
  0x15   : > { %s165_s5 = scalar_select %p164_p10, %s2179_s16, 1 }
  0x16   : > { %s2467_s16 = scalar_lea.sflag [#allocation3], %s161_s29 }
  0x17   : > { %s2029_s6 = smul.u32 160, %s165_s5 }
  0x19   : > { %s2233_s9 = scalar_lea.vmem %s2508_s0, %s2029_s6  ;;  %s2438_s6 = scalar_lea.vmem [#allocation2], %s1610_s30 }
  0x1a   : > { %v178_v4 = vld [vmem:[%s2233_s9 + $0x1] sm:$0xff]  ;;  %v1659_v5 = vld [vmem:[%s2233_s9 + $0x11] sm:$0xff]  ;;  %s1544_s8 = sshll.u32 %s2438_s6, 4  ;;  %s2459_s8 = int_to_ptr.vmem [resolvable:$true] %s1544_s8 }
  0x1b   : > { %v2238_v6 = vld [vmem:[%s2233_s9 + $0x21] sm:$0xff]  ;;  %1839 = vmatprep.mubr.msk.f32.mxu1 %vm188_vm1, %v178_v4  ;;  %1895 = vmatprep.mubr.msk.f32.mxu0 %vm188_vm1, %v1659_v5  ;;  %v2243_v7 = vld [vmem:[%s2233_s9 + $0x31] sm:$0xff]  ;;  %s2071_s17 = scalar_lea.vmem %s2459_s8, 1024  ;;  %p2078_p0 = scmp.lt.s32.totalorder %s2459_s8, %s2076_s20 }
  0x1c   : > { %1840 = vmatmul.mubr.msk.f32.vlgmr.msra.gmra.mrb[0].mxu1 %vm188_vm1, %v1659_v5  ;;  %1896 = vmatmul.mubr.msk.f32.vlgmr.msra.gmra.mrb[0].mxu0 %vm188_vm1, %v2238_v6  ;;  %v2257_v10 = vld [vmem:[%s2233_s9 + $0x41] sm:$0xff]  ;;  %v1677_v11 = vld [vmem:[%s2233_s9 + $0x12] sm:$0xff]  ;;  %p2072_p11 = scmp.ne.s32.totalorder %s2459_s8, %s2071_s17  ;;  %p2079_p1 = scmp.lt.s32.totalorder %s2077_s24, %s2071_s17 }
  0x1d   : > { %1852 = vmatpush3.msk.msra.mxu1 %vm213_vm0, %v177_v2  ;;  %1908 = vmatpush3.msk.msra.mxu0 %vm213_vm0, %v1685_v3  ;;  %v2274_v12 = vld [vmem:[%s2233_s9 + $0x51] sm:$0xff]  ;;  %v2277_v13 = vld [vmem:[%s2233_s9 + $0x22] sm:$0xff] }
  0x1e   : > { %1842 = vmatprep.mubr.msk.f32.mxu1 %vm188_vm1, %v2238_v6  ;;  %1898 = vmatprep.mubr.msk.f32.mxu0 %vm188_vm1, %v2243_v7  ;;  %v2280_v14 = vld [vmem:[%s2233_s9 + $0x61] sm:$0xff]  ;;  %v2283_v15 = vld [vmem:[%s2233_s9 + $0x32] sm:$0xff]  ;;  %p2073_p12 = pnand %p2072_p11, %p2196_p5  ;;  %p2080_p2 = por %p2079_p1, %p2078_p0 }
  0x1f   : > { %1921 = vmatprep.subr.msk.mxu0 %vm213_vm0, %v1703_v8  ;;  %1865 = vmatprep.subr.msk.mxu1 %vm213_vm0, %v1631_v9  ;;  %v2296_v17 = vld [vmem:[%s2233_s9 + $0x71] sm:$0xff]  ;;  %v2299_v18 = vld [vmem:[%s2233_s9 + $0x42] sm:$0xff] }
  0x20   : > { %1843 = vmatmul.mubr.msk.f32.gmra.mrb[2].mxu1 %vm188_vm1, %v2243_v7  ;;  %1899 = vmatmul.mubr.msk.f32.gmra.mrb[2].mxu0 %vm188_vm1, %v2257_v10  ;;  %v169_v19 = vld [vmem:[%s2233_s9] sm:$0xff]  ;;  %v2305_v20 = vld [vmem:[%s2233_s9 + $0x52] sm:$0xff]  ;;  %p2074_p13 = pneg %p2073_p12 }
  0x21   : > { %1845 = vmatprep.mubr.msk.f32.mxu1 %vm188_vm1, %v2257_v10  ;;  %1909 = vmatprep.mubr.msk.f32.mxu0 %vm188_vm1, %v1677_v11  ;;  %v170_v21 = vld [vmem:[%s2233_s9 + $0x10] sm:$0xff]  ;;  %v2317_v22 = vld [vmem:[%s2233_s9 + $0x62] sm:$0xff] }
  0x22   : > { %v171_v23 = vld [vmem:[%s2233_s9 + $0x20] sm:$0xff]  ;;  %v2321_v24 = vld [vmem:[%s2233_s9 + $0x72] sm:$0xff]  ;;  %p2081_p3 = pnand %p2080_p2, %p2074_p13 }
  0x23   : > { %v172_v26 = vld [vmem:[%s2233_s9 + $0x30] sm:$0xff]  ;;  %v2333_v27 = vld [vmem:[%s2233_s9 + $0x82] sm:$0xff] }
  0x24   : > { %1846 = vmatmul.mubr.msk.f32.gmra.mrb[4].mxu1 %vm188_vm1, %v2274_v12  ;;  %1910 = vmatmul.mubr.msk.f32.vlgmr.msra.gmra.mrb[0].mxu0 %vm188_vm1, %v2277_v13  ;;  %v173_v28 = vld [vmem:[%s2233_s9 + $0x40] sm:$0xff]  ;;  %v174_v29 = vld [vmem:[%s2233_s9 + $0x50] sm:$0xff] }
  0x25   : > { %1922 = vmatpush3.msk.msra.mxu0 %vm213_vm0, %v1703_v8  ;;  %1848 = vmatprep.mubr.msk.f32.mxu1 %vm188_vm1, %v2280_v14  ;;  %v175_v30 = vld [vmem:[%s2233_s9 + $0x60] sm:$0xff]  ;;  %v176_v32 = vld [vmem:[%s2233_s9 + $0x70] sm:$0xff] }
  0x26   : > { %1912 = vmatprep.mubr.msk.f32.mxu0 %vm188_vm1, %v2283_v15  ;;  %1935 = vmatprep.subr.msk.mxu0 %vm213_vm0, %v1721_v16  ;;  %v454_v33 = vld [vmem:[%s2233_s9 + $0x2] sm:$0xff]  ;;  %v1702_v35 = vld [vmem:[%s2233_s9 + $0x90] sm:$0xff] }
  0x27   : > { %v1701_v34 = vld [vmem:[%s2233_s9 + $0x80] sm:$0xff]  ;;  %v1720_v37 = vld [vmem:[%s2233_s9 + $0x91] sm:$0xff] }
  0x28   : > { %1849 = vmatmul.mubr.msk.f32.gmra.mrb[6].mxu1 %vm188_vm1, %v2296_v17  ;;  %1913 = vmatmul.mubr.msk.f32.gmra.mrb[2].mxu0 %vm188_vm1, %v2299_v18  ;;  %v1719_v36 = vld [vmem:[%s2233_s9 + $0x81] sm:$0xff]  ;;  %v1738_v38 = vld [vmem:[%s2233_s9 + $0x92] sm:$0xff] }
  0x29   : > { %1853 = vmatprep.mubr.msk.f32.mxu1 %vm188_vm1, %v169_v19  ;;  %1915 = vmatprep.mubr.msk.f32.mxu0 %vm188_vm1, %v2305_v20 }
  0x2c   : > { %1854 = vmatmul.mubr.msk.f32.vlgmr.msra.gmra.mrb[0].mxu1 %vm188_vm1, %v170_v21  ;;  %1916 = vmatmul.mubr.msk.f32.gmra.mrb[4].mxu0 %vm188_vm1, %v2317_v22 }
  0x2d   : > { %1866 = vmatpush3.msk.msra.mxu1 %vm213_vm0, %v1631_v9  ;;  %1856 = vmatprep.mubr.msk.f32.mxu1 %vm188_vm1, %v171_v23 }
  0x2e   : > { %1918 = vmatprep.mubr.msk.f32.mxu0 %vm188_vm1, %v2321_v24  ;;  %1879 = vmatprep.subr.msk.mxu1 %vm213_vm0, %v1649_v25 }
  0x30   : > { %1857 = vmatmul.mubr.msk.f32.gmra.mrb[2].mxu1 %vm188_vm1, %v172_v26  ;;  %1919 = vmatmul.mubr.msk.f32.gmra.mrb[6].mxu0 %vm188_vm1, %v2333_v27 }
  0x31   : > { %1859 = vmatprep.mubr.msk.f32.mxu1 %vm188_vm1, %v173_v28  ;;  %1923 = vmatprep.mubr.msk.f32.mxu0 %vm188_vm1, %v171_v23 }
  0x34   : > { %1860 = vmatmul.mubr.msk.f32.gmra.mrb[4].mxu1 %vm188_vm1, %v174_v29  ;;  %1924 = vmatmul.mubr.msk.f32.vlgmr.msra.gmra.mrb[0].mxu0 %vm188_vm1, %v172_v26 }
  0x35   : > { %1936 = vmatpush3.msk.msra.mxu0 %vm213_vm0, %v1721_v16  ;;  %1862 = vmatprep.mubr.msk.f32.mxu1 %vm188_vm1, %v175_v30 }
  0x36   : > { %1926 = vmatprep.mubr.msk.f32.mxu0 %vm188_vm1, %v173_v28  ;;  %1949 = vmatprep.subr.msk.mxu0 %vm213_vm0, %v1739_v31 }
  0x38   : > { %1863 = vmatmul.mubr.msk.f32.gmra.mrb[6].mxu1 %vm188_vm1, %v176_v32  ;;  %1927 = vmatmul.mubr.msk.f32.gmra.mrb[2].mxu0 %vm188_vm1, %v174_v29 }
  0x39   : > { %1867 = vmatprep.mubr.msk.f32.mxu1 %vm188_vm1, %v454_v33  ;;  %1929 = vmatprep.mubr.msk.f32.mxu0 %vm188_vm1, %v175_v30 }
  0x3c   : > { %1868 = vmatmul.mubr.msk.f32.vlgmr.msra.gmra.mrb[0].mxu1 %vm188_vm1, %v1677_v11  ;;  %1930 = vmatmul.mubr.msk.f32.gmra.mrb[4].mxu0 %vm188_vm1, %v176_v32 }
  0x3d   : > { %1880 = vmatpush3.msk.msra.mxu1 %vm213_vm0, %v1649_v25  ;;  %1870 = vmatprep.mubr.msk.f32.mxu1 %vm188_vm1, %v2277_v13 }
  0x3e   : > { %1932 = vmatprep.mubr.msk.f32.mxu0 %vm188_vm1, %v1701_v34  ;;  %1963 = vmatprep.subr.msk.mxu1 %vm213_vm0, %v2212_v1 }
  0x40   : > { %1871 = vmatmul.mubr.msk.f32.gmra.mrb[2].mxu1 %vm188_vm1, %v2283_v15  ;;  %1933 = vmatmul.mubr.msk.f32.gmra.mrb[6].mxu0 %vm188_vm1, %v1702_v35 }
  0x41   : > { %1873 = vmatprep.mubr.msk.f32.mxu1 %vm188_vm1, %v2299_v18  ;;  %1937 = vmatprep.mubr.msk.f32.mxu0 %vm188_vm1, %v2238_v6 }
  0x44   : > { %1874 = vmatmul.mubr.msk.f32.gmra.mrb[4].mxu1 %vm188_vm1, %v2305_v20  ;;  %1938 = vmatmul.mubr.msk.f32.vlgmr.msra.gmra.mrb[0].mxu0 %vm188_vm1, %v2243_v7 }
  0x45   : > { %1950 = vmatpush3.msk.msra.mxu0 %vm213_vm0, %v1739_v31  ;;  %1876 = vmatprep.mubr.msk.f32.mxu1 %vm188_vm1, %v2317_v22 }
  0x46   : > { %1940 = vmatprep.mubr.msk.f32.mxu0 %vm188_vm1, %v2257_v10 }
  0x48   : > { %1877 = vmatmul.mubr.msk.f32.gmra.mrb[6].mxu1 %vm188_vm1, %v2321_v24  ;;  %1941 = vmatmul.mubr.msk.f32.gmra.mrb[2].mxu0 %vm188_vm1, %v2274_v12 }
  0x49   : > { %1881 = vmatprep.mubr.msk.f32.mxu1 %vm188_vm1, %v170_v21  ;;  %1943 = vmatprep.mubr.msk.f32.mxu0 %vm188_vm1, %v2280_v14 }
  0x4c   : > { %1882 = vmatmul.mubr.msk.f32.vlgmr.msra.gmra.mrb[0].mxu1 %vm188_vm1, %v171_v23  ;;  %1944 = vmatmul.mubr.msk.f32.gmra.mrb[4].mxu0 %vm188_vm1, %v2296_v17 }
  0x4d   : > { %1964 = vmatpush3.msk.msra.mxu1 %vm213_vm0, %v2212_v1  ;;  %1884 = vmatprep.mubr.msk.f32.mxu1 %vm188_vm1, %v172_v26 }
  0x4e   : > { %1946 = vmatprep.mubr.msk.f32.mxu0 %vm188_vm1, %v1719_v36 }
  0x50   : > { %1885 = vmatmul.mubr.msk.f32.gmra.mrb[2].mxu1 %vm188_vm1, %v173_v28  ;;  %1947 = vmatmul.mubr.msk.f32.gmra.mrb[6].mxu0 %vm188_vm1, %v1720_v37 }
  0x51   : > { %1887 = vmatprep.mubr.msk.f32.mxu1 %vm188_vm1, %v174_v29  ;;  %1951 = vmatprep.mubr.msk.f32.mxu0 %vm188_vm1, %v2277_v13 }
  0x54   : > { %1888 = vmatmul.mubr.msk.f32.gmra.mrb[4].mxu1 %vm188_vm1, %v175_v30  ;;  %1952 = vmatmul.mubr.msk.f32.vlgmr.msra.gmra.mrb[0].mxu0 %vm188_vm1, %v2283_v15 }
  0x55   : > { %1890 = vmatprep.mubr.msk.f32.mxu1 %vm188_vm1, %v176_v32  ;;  %1954 = vmatprep.mubr.msk.f32.mxu0 %vm188_vm1, %v2299_v18 }
  0x58   : > { %1891 = vmatmul.mubr.msk.f32.gmra.mrb[6].mxu1 %vm188_vm1, %v1701_v34  ;;  %1955 = vmatmul.mubr.msk.f32.gmra.mrb[2].mxu0 %vm188_vm1, %v2305_v20 }
  0x59   : > { %1901 = vmatprep.mubr.msk.f32.mxu1 %vm188_vm1, %v2274_v12  ;;  %1957 = vmatprep.mubr.msk.f32.mxu0 %vm188_vm1, %v2317_v22 }
  0x5c   : > { %1902 = vmatmul.mubr.msk.f32.vlgmr.msra.gmra.mrb[4].mxu1 %vm188_vm1, %v2280_v14  ;;  %1958 = vmatmul.mubr.msk.f32.gmra.mrb[4].mxu0 %vm188_vm1, %v2321_v24 }
  0x5d   : > { %1904 = vmatprep.mubr.msk.f32.mxu1 %vm188_vm1, %v2296_v17  ;;  %1960 = vmatprep.mubr.msk.f32.mxu0 %vm188_vm1, %v2333_v27 }
  0x60   : > { %1905 = vmatmul.mubr.msk.f32.gmra.mrb[6].mxu1 %vm188_vm1, %v1719_v36  ;;  %1961 = vmatmul.mubr.msk.f32.gmra.mrb[6].mxu0 %vm188_vm1, %v1738_v38 }
 0x11f   : > { %v1883_v39 = vpop.f32.mrb[0].mxu1 }
 0x120   : > { %v708_v40 = vpop.f32.mrb[1].mxu1 }
 0x123   : > { %v1886_v41 = vpop.f32.mrb[2].mxu1 }
 0x124   : > { %v718_v42 = vpop.f32.mrb[3].mxu1 }
 0x127   : > { %v1953_v43 = vpop.f32.mrb[0].mxu0 }
 0x128   : > { %v1965_v45 = vadd.f32 %v1953_v43, %v1883_v39  ;;  %v1459_v46 = vpop.f32.mrb[1].mxu0 }
 0x129   : > { %v1966_v47 = vadd.f32 %v1459_v46, %v708_v40 }
 0x12a   : > { %v1514_v48 = vadd.f32 %v1965_v45, %v1749_v44 }
 0x12b   : > { %v1513_v49 = vadd.f32 %v1966_v47, %v1749_v44  ;;  %v1956_v50 = vpop.f32.mrb[2].mxu0 }
 0x12c   : > { %1523 = vst.msk [vmem:[%s2438_s6 + $0x8] sm:$0xff] %vm1521_vm2, %v1514_v48  ;;  %v1967_v51 = vadd.f32 %v1956_v50, %v1886_v41  ;;  %v1469_v52 = vpop.f32.mrb[3].mxu0 }
 0x12d   : > { %1522 = vst.msk [vmem:[%s2438_s6] sm:$0xff] %vm1521_vm2, %v1513_v49  ;;  %v1968_v53 = vadd.f32 %v1469_v52, %v718_v42 }
 0x12e   : > { %v1516_v54 = vadd.f32 %v1967_v51, %v1749_v44 }
 0x12f   : > { %v1515_v55 = vadd.f32 %v1968_v53, %v1749_v44  ;;  %v1903_v56 = vpop.f32.mrb[4].mxu1  ;;  %v1959_v57 = vpop.f32.mrb[4].mxu0 }
 0x130   : > { %1525 = vst.msk [vmem:[%s2438_s6 + $0x18] sm:$0xff] %vm1521_vm2, %v1516_v54  ;;  %v1969_v58 = vadd.f32 %v1959_v57, %v1903_v56  ;;  %v878_v59 = vpop.f32.mrb[5].mxu1  ;;  %v1479_v60 = vpop.f32.mrb[5].mxu0 }
 0x131   : > { %1524 = vst.msk [vmem:[%s2438_s6 + $0x10] sm:$0xff] %vm1521_vm2, %v1515_v55  ;;  %v1970_v61 = vadd.f32 %v1479_v60, %v878_v59 }
 0x132   : > { %v1518_v62 = vadd.f32 %v1969_v58, %v1749_v44 }
 0x133   : > { %v1517_v63 = vadd.f32 %v1970_v61, %v1749_v44  ;;  %v1906_v0 = vpop.f32.mrb[6].mxu1  ;;  %v1962_v1 = vpop.f32.mrb[6].mxu0 }
 0x134   : > { %1527 = vst.msk [vmem:[%s2438_s6 + $0x28] sm:$0xff] %vm1521_vm2, %v1518_v62  ;;  %v1971_v2 = vadd.f32 %v1962_v1, %v1906_v0  ;;  %v888_v3 = vpop.f32.mrb[7].mxu1  ;;  %v1489_v4 = vpop.f32.mrb[7].mxu0 }
 0x135   : > { %1526 = vst.msk [vmem:[%s2438_s6 + $0x20] sm:$0xff] %vm1521_vm2, %v1517_v63  ;;  %v1972_v5 = vadd.f32 %v1489_v4, %v888_v3 }
 0x136   : > { %v1520_v6 = vadd.f32 %v1971_v2, %v1749_v44 }
 0x137   : > { %v1519_v7 = vadd.f32 %v1972_v5, %v1749_v44 }
 0x138   : > { %1529 = vst.msk [vmem:[%s2438_s6 + $0x38] sm:$0xff] %vm1521_vm2, %v1520_v6 }
 0x139   : > { %1528 = vst.msk [vmem:[%s2438_s6 + $0x30] sm:$0xff] %vm1521_vm2, %v1519_v7 }
 0x13a   : > { %2084 = shalt.err (!%p2081_p3)
}
 0x13b   : > { %s2085_s25 = scalar_lea.hbm %s2457_s11, 1024  ;;  %s2089_s28 = scalar_lea.hbm %s2511_s3, 2048 }
 0x13c   : > { %p2086_p4 = scmp.ne.s32.totalorder %s2457_s11, %s2085_s25  ;;  %p2090_p9 = scmp.lt.u32.totalorder %s2457_s11, %s2511_s3 }
 0x13d   : > { %p2091_p10 = scmp.lt.u32.totalorder %s2089_s28, %s2085_s25  ;;  %p2093_p12 = scmp.lt.u32.totalorder %s2085_s25, %s2457_s11 }
 0x13e   : > { %p2087_p7 = pnand %p2086_p4, %p2196_p5 }
 0x13f   : > { %p2092_p11 = por %p2091_p10, %p2090_p9 }
 0x140   : > { %p2088_p8 = pneg %p2087_p7 }
 0x141   : > { %p2094_p13 = por %p2093_p12, %p2092_p11 }
 0x143   : > { %p2095_p0 = pnand %p2094_p13, %p2088_p8 }
 0x145   : > { %2098 = shalt.err (!%p2095_p0)
}
 0x146   : > { %s2136_s4 = smov 128   ;;  %s2137_s5 = smov 8  }
 0x147   : > { %2030 = dma.vmem_to_hbm [thread:$0]  (%p2196_p5), %s2459_s8, 1024, %s2457_s11, %s2467_s16, %s2136_s4, %s2136_s4, %s2137_s5  }
 0x148 PF: > { %p2036_p1 = scmp.ge.s32.totalorder %s2133_s15, 2  ;;  %s1559_s6 = sand.u32 1, %s2121_s12  }
 0x149   : > { %s1560_s7 = scalar_lea.sflag [#allocation3], %s1559_s6 }
 0x14a   : > { %p2033_p2 = pnand %p2036_p1, %p2200_p6 }
 0x14c   : > { %2116 = dma.done.wait (!%p2033_p2), %s1560_s7, 1024  }
 0x14d   : > { %2118 = vsyncadd (!%p2033_p2), %s1560_s7, 4294966272  ;;  %p13_p3 = scmp.ge.s32.totalorder %s2183_s18, 4   ;;  %s2514_s12 = smov %s2125_s13 }
 0x14e   : > { %s2515_s13 = smov %s2129_s14  ;;  %s2516_s14 = smov %s2194_s21 }
 0x14f   : > { %s2517_s15 = smov %s2183_s18  ;;  %15 = sbr.rel (!%p13_p3) target bundleno = 3 (0x3), region = 77 }
 0x156   :  { %1565 = vsyncpa [#allocation3], 1 }
 0x157   :  { %1567 = vsyncpa [#allocation3 + $0x1], 1 }

</bundles_post_ra>
